<compile_context>
chip_gen: v7x
topology: tpu7x:2x2x1
jax: 0.10.0
libtpu: 0.0.40
codegen_flags: <defaults>
</compile_context>

<pallas_src>
import jax
import jax.numpy as jnp
from jax.experimental import pallas as pl
from jax.experimental.pallas import tpu as pltpu


# ---------------------------------------------------------------------------
# Kernels
# ---------------------------------------------------------------------------
def _residual_small_c_kernel(w_ref, b_ref, x_ref, o_ref):
    """Small-C path: unrolled VPU channel mix, fused bias + residual add.

    x_ref/o_ref : (C, hw_tile) VMEM blocks (spatial on lanes, channels on sublanes)
    w_ref       : (C, C) in SMEM
    b_ref       : (C,)  in SMEM
    """
    C = x_ref.shape[0]
    for c in range(C):                                   # unrolled at trace time
        acc = x_ref[c : c + 1, :].astype(jnp.float32) + b_ref[c]   # residual + bias
        for k in range(C):
            acc = acc + x_ref[k : k + 1, :].astype(jnp.float32) * w_ref[c, k]
        o_ref[c : c + 1, :] = acc.astype(o_ref.dtype)


def _residual_mxu_kernel(w_ref, b_ref, x_ref, o_ref):
    """Large-C path: MXU channel mix, fused bias + residual add.

    x_ref/o_ref : (C, hw_tile) VMEM blocks
    w_ref       : (C, C) VMEM (resident)
    b_ref       : (C, 1) VMEM (resident)
    """
    x = x_ref[...].astype(jnp.float32)
    fx = jnp.dot(w_ref[...].astype(jnp.float32), x,
                 preferred_element_type=jnp.float32)
    o_ref[...] = (fx + b_ref[...] + x).astype(o_ref.dtype)


# ---------------------------------------------------------------------------
# Wrapper
# ---------------------------------------------------------------------------
def _residual_pointwise_impl(x_nchw, weight, bias, *, hw_tile=None):
    """y = fn(x) + x with fn = 1x1 conv (weight: (C, C), bias: (C,)); NCHW in/out."""
    N, C, H, W = x_nchw.shape
    HW = H * W
    x3d = x_nchw.reshape(N, C, HW)          # free reshape, no data movement

    if hw_tile is None:
        for cand in (2048, 1024, 512, 256, 128):
            if HW % cand == 0:
                hw_tile = cand
                break
        else:
            hw_tile = HW                    # full extent (always legal)
    assert HW % hw_tile == 0, "hw_tile must divide H*W"

    small_c = C <= 32
    itemsize = jnp.dtype(x_nchw.dtype).itemsize

    if small_c:
        kernel = _residual_small_c_kernel
        w_arg, b_arg = weight, bias
        # whole (C,C) weight + (C,) bias live in SMEM; read as scalars in-kernel
        w_spec = pl.BlockSpec(memory_space=pltpu.MemorySpace.SMEM)
        b_spec = pl.BlockSpec(memory_space=pltpu.MemorySpace.SMEM)
        extra_vmem = 0
    else:
        kernel = _residual_mxu_kernel
        w_arg, b_arg = weight, bias.reshape(C, 1)
        w_spec = pl.BlockSpec((C, C), lambda n, j: (0, 0))   # resident in VMEM
        b_spec = pl.BlockSpec((C, 1), lambda n, j: (0, 0))   # resident in VMEM
        extra_vmem = C * C * jnp.dtype(weight.dtype).itemsize + C * itemsize

    # double-buffered x-in + double-buffered out + resident params + headroom
    tile_bytes = C * hw_tile * itemsize
    vmem_limit = int(min(max(4 * tile_bytes + extra_vmem + (4 << 20), 16 << 20),
                         48 << 20))

    out3d = pl.pallas_call(
        kernel,
        out_shape=jax.ShapeDtypeStruct((N, C, HW), x3d.dtype),
        grid_spec=pltpu.PrefetchScalarGridSpec(
            num_scalar_prefetch=0,
            grid=(N, HW // hw_tile),
            in_specs=[
                w_spec,
                b_spec,
                pl.BlockSpec((None, C, hw_tile), lambda n, j: (n, 0, j)),  # x block
            ],
            out_specs=pl.BlockSpec((None, C, hw_tile), lambda n, j: (n, 0, j)),
        ),
        compiler_params=pltpu.CompilerParams(
            dimension_semantics=("parallel", "parallel"),
            vmem_limit_bytes=vmem_limit,
        ),
    )(w_arg, b_arg, x3d)

    return out3d.reshape(N, C, H, W)


residual_pointwise = jax.jit(_residual_pointwise_impl, static_argnames=("hw_tile",))


# ---------------------------------------------------------------------------
# Demo / correctness check
# ---------------------------------------------------------------------------
if __name__ == "__main__":
    key = jax.random.PRNGKey(0)
    kx, kw, kb = jax.random.split(key, 3)

    N, C, H, W = 2, 4, 16, 16
    x = jax.random.normal(kx, (N, C, H, W), dtype=jnp.float32)

    # deterministic "fn" parameters (1x1 conv / channel-mix): weight (C, C), bias (C,)
    weight = jax.random.normal(kw, (C, C), dtype=jnp.float32) * 0.1
    bias = jax.random.normal(kb, (C,), dtype=jnp.float32) * 0.1

    y = residual_pointwise(x, weight, bias)
    y = jax.block_until_ready(y)

    # pure-JAX reference of Residual(fn): fn(x) + x
    fx_ref = jnp.einsum("nchw,oc->nohw", x, weight) + bias[None, :, None, None]
    y_ref = fx_ref + x

    assert y.shape == x.shape
    assert jnp.allclose(y, y_ref, atol=1e-5, rtol=1e-5)
    print("KERNEL_OK")
</pallas_src>

<mosaic_0001>
module attributes {stable_mosaic.version = 11 : i64} {
  func.func @_residual_small_c_kernel(%arg0: i32, %arg1: i32, %arg2: memref<4x4xf32, #tpu.memory_space<smem>>, %arg3: memref<4xf32, #tpu.memory_space<smem>>, %arg4: memref<1x4x256xf32, #tpu.memory_space<vmem>>, %arg5: memref<1x4x256xf32, #tpu.memory_space<vmem>>) attributes {dimension_semantics = [#tpu.dimension_semantics<parallel>, #tpu.dimension_semantics<parallel>], iteration_bounds = array<i64: 2, 1>, scalar_prefetch = 0 : i64, scratch_operands = 0 : i64, tpu.core_type = #tpu.core_type<tc>, window_params = [{transform_indices = @transform_0, window_bounds = array<i64: 4, 4>}, {transform_indices = @transform_1, window_bounds = array<i64: 4>}, {transform_indices = @transform_2, window_bounds = array<i64: 1, 4, 256>}, {transform_indices = @transform_3, window_bounds = array<i64: 1, 4, 256>}]} {
    %c0 = arith.constant 0 : index
    %c0_0 = arith.constant 0 : index
    %c0_1 = arith.constant 0 : index
    %0 = vector.load %arg4[%c0, %c0_0, %c0_1] : memref<1x4x256xf32, #tpu.memory_space<vmem>>, vector<1x1x256xf32>
    %1 = vector.shape_cast %0 : vector<1x1x256xf32> to vector<1x256xf32>
    %c0_2 = arith.constant 0 : index
    %2 = memref.load %arg3[%c0_2] : memref<4xf32, #tpu.memory_space<smem>>
    %3 = vector.broadcast %2 : f32 to vector<1x256xf32>
    %4 = arith.addf %1, %3 : vector<1x256xf32>
    %c0_3 = arith.constant 0 : index
    %c0_4 = arith.constant 0 : index
    %c0_5 = arith.constant 0 : index
    %5 = vector.load %arg4[%c0_3, %c0_4, %c0_5] : memref<1x4x256xf32, #tpu.memory_space<vmem>>, vector<1x1x256xf32>
    %6 = vector.shape_cast %5 : vector<1x1x256xf32> to vector<1x256xf32>
    %c0_6 = arith.constant 0 : index
    %c0_7 = arith.constant 0 : index
    %7 = memref.load %arg2[%c0_6, %c0_7] : memref<4x4xf32, #tpu.memory_space<smem>>
    %8 = vector.broadcast %7 : f32 to vector<1x256xf32>
    %9 = arith.mulf %6, %8 : vector<1x256xf32>
    %10 = arith.addf %4, %9 : vector<1x256xf32>
    %c0_8 = arith.constant 0 : index
    %c1 = arith.constant 1 : index
    %c0_9 = arith.constant 0 : index
    %11 = vector.load %arg4[%c0_8, %c1, %c0_9] : memref<1x4x256xf32, #tpu.memory_space<vmem>>, vector<1x1x256xf32>
    %12 = vector.shape_cast %11 : vector<1x1x256xf32> to vector<1x256xf32>
    %c0_10 = arith.constant 0 : index
    %c1_11 = arith.constant 1 : index
    %13 = memref.load %arg2[%c0_10, %c1_11] : memref<4x4xf32, #tpu.memory_space<smem>>
    %14 = vector.broadcast %13 : f32 to vector<1x256xf32>
    %15 = arith.mulf %12, %14 : vector<1x256xf32>
    %16 = arith.addf %10, %15 : vector<1x256xf32>
    %c0_12 = arith.constant 0 : index
    %c2 = arith.constant 2 : index
    %c0_13 = arith.constant 0 : index
    %17 = vector.load %arg4[%c0_12, %c2, %c0_13] : memref<1x4x256xf32, #tpu.memory_space<vmem>>, vector<1x1x256xf32>
    %18 = vector.shape_cast %17 : vector<1x1x256xf32> to vector<1x256xf32>
    %c0_14 = arith.constant 0 : index
    %c2_15 = arith.constant 2 : index
    %19 = memref.load %arg2[%c0_14, %c2_15] : memref<4x4xf32, #tpu.memory_space<smem>>
    %20 = vector.broadcast %19 : f32 to vector<1x256xf32>
    %21 = arith.mulf %18, %20 : vector<1x256xf32>
    %22 = arith.addf %16, %21 : vector<1x256xf32>
    %c0_16 = arith.constant 0 : index
    %c3 = arith.constant 3 : index
    %c0_17 = arith.constant 0 : index
    %23 = vector.load %arg4[%c0_16, %c3, %c0_17] : memref<1x4x256xf32, #tpu.memory_space<vmem>>, vector<1x1x256xf32>
    %24 = vector.shape_cast %23 : vector<1x1x256xf32> to vector<1x256xf32>
    %c0_18 = arith.constant 0 : index
    %c3_19 = arith.constant 3 : index
    %25 = memref.load %arg2[%c0_18, %c3_19] : memref<4x4xf32, #tpu.memory_space<smem>>
    %26 = vector.broadcast %25 : f32 to vector<1x256xf32>
    %27 = arith.mulf %24, %26 : vector<1x256xf32>
    %28 = arith.addf %22, %27 : vector<1x256xf32>
    %c0_20 = arith.constant 0 : index
    %c0_21 = arith.constant 0 : index
    %c0_22 = arith.constant 0 : index
    %29 = vector.load %arg5[%c0_20, %c0_21, %c0_22] : memref<1x4x256xf32, #tpu.memory_space<vmem>>, vector<1x1x256xf32>
    %30 = vector.shape_cast %29 : vector<1x1x256xf32> to vector<1x256xf32>
    %31 = vector.shape_cast %28 : vector<1x256xf32> to vector<1x1x256xf32>
    tpu.vector_store %arg5[%c0_20, %c0_21, %c0_22], %31 {strides = array<i32>} : memref<1x4x256xf32, #tpu.memory_space<vmem>>, vector<1x1x256xf32>,
    %c0_23 = arith.constant 0 : index
    %c1_24 = arith.constant 1 : index
    %c0_25 = arith.constant 0 : index
    %32 = vector.load %arg4[%c0_23, %c1_24, %c0_25] : memref<1x4x256xf32, #tpu.memory_space<vmem>>, vector<1x1x256xf32>
    %33 = vector.shape_cast %32 : vector<1x1x256xf32> to vector<1x256xf32>
    %c1_26 = arith.constant 1 : index
    %34 = memref.load %arg3[%c1_26] : memref<4xf32, #tpu.memory_space<smem>>
    %35 = vector.broadcast %34 : f32 to vector<1x256xf32>
    %36 = arith.addf %33, %35 : vector<1x256xf32>
    %c0_27 = arith.constant 0 : index
    %c0_28 = arith.constant 0 : index
    %c0_29 = arith.constant 0 : index
    %37 = vector.load %arg4[%c0_27, %c0_28, %c0_29] : memref<1x4x256xf32, #tpu.memory_space<vmem>>, vector<1x1x256xf32>
    %38 = vector.shape_cast %37 : vector<1x1x256xf32> to vector<1x256xf32>
    %c1_30 = arith.constant 1 : index
    %c0_31 = arith.constant 0 : index
    %39 = memref.load %arg2[%c1_30, %c0_31] : memref<4x4xf32, #tpu.memory_space<smem>>
    %40 = vector.broadcast %39 : f32 to vector<1x256xf32>
    %41 = arith.mulf %38, %40 : vector<1x256xf32>
    %42 = arith.addf %36, %41 : vector<1x256xf32>
    %c0_32 = arith.constant 0 : index
    %c1_33 = arith.constant 1 : index
    %c0_34 = arith.constant 0 : index
    %43 = vector.load %arg4[%c0_32, %c1_33, %c0_34] : memref<1x4x256xf32, #tpu.memory_space<vmem>>, vector<1x1x256xf32>
    %44 = vector.shape_cast %43 : vector<1x1x256xf32> to vector<1x256xf32>
    %c1_35 = arith.constant 1 : index
    %c1_36 = arith.constant 1 : index
    %45 = memref.load %arg2[%c1_35, %c1_36] : memref<4x4xf32, #tpu.memory_space<smem>>
    %46 = vector.broadcast %45 : f32 to vector<1x256xf32>
    %47 = arith.mulf %44, %46 : vector<1x256xf32>
    %48 = arith.addf %42, %47 : vector<1x256xf32>
    %c0_37 = arith.constant 0 : index
    %c2_38 = arith.constant 2 : index
    %c0_39 = arith.constant 0 : index
    %49 = vector.load %arg4[%c0_37, %c2_38, %c0_39] : memref<1x4x256xf32, #tpu.memory_space<vmem>>, vector<1x1x256xf32>
    %50 = vector.shape_cast %49 : vector<1x1x256xf32> to vector<1x256xf32>
    %c1_40 = arith.constant 1 : index
    %c2_41 = arith.constant 2 : index
    %51 = memref.load %arg2[%c1_40, %c2_41] : memref<4x4xf32, #tpu.memory_space<smem>>
    %52 = vector.broadcast %51 : f32 to vector<1x256xf32>
    %53 = arith.mulf %50, %52 : vector<1x256xf32>
    %54 = arith.addf %48, %53 : vector<1x256xf32>
    %c0_42 = arith.constant 0 : index
    %c3_43 = arith.constant 3 : index
    %c0_44 = arith.constant 0 : index
    %55 = vector.load %arg4[%c0_42, %c3_43, %c0_44] : memref<1x4x256xf32, #tpu.memory_space<vmem>>, vector<1x1x256xf32>
    %56 = vector.shape_cast %55 : vector<1x1x256xf32> to vector<1x256xf32>
    %c1_45 = arith.constant 1 : index
    %c3_46 = arith.constant 3 : index
    %57 = memref.load %arg2[%c1_45, %c3_46] : memref<4x4xf32, #tpu.memory_space<smem>>
    %58 = vector.broadcast %57 : f32 to vector<1x256xf32>
    %59 = arith.mulf %56, %58 : vector<1x256xf32>
    %60 = arith.addf %54, %59 : vector<1x256xf32>
    %c0_47 = arith.constant 0 : index
    %c1_48 = arith.constant 1 : index
    %c0_49 = arith.constant 0 : index
    %61 = vector.load %arg5[%c0_47, %c1_48, %c0_49] : memref<1x4x256xf32, #tpu.memory_space<vmem>>, vector<1x1x256xf32>
    %62 = vector.shape_cast %61 : vector<1x1x256xf32> to vector<1x256xf32>
    %63 = vector.shape_cast %60 : vector<1x256xf32> to vector<1x1x256xf32>
    tpu.vector_store %arg5[%c0_47, %c1_48, %c0_49], %63 {strides = array<i32>} : memref<1x4x256xf32, #tpu.memory_space<vmem>>, vector<1x1x256xf32>,
    %c0_50 = arith.constant 0 : index
    %c2_51 = arith.constant 2 : index
    %c0_52 = arith.constant 0 : index
    %64 = vector.load %arg4[%c0_50, %c2_51, %c0_52] : memref<1x4x256xf32, #tpu.memory_space<vmem>>, vector<1x1x256xf32>
    %65 = vector.shape_cast %64 : vector<1x1x256xf32> to vector<1x256xf32>
    %c2_53 = arith.constant 2 : index
    %66 = memref.load %arg3[%c2_53] : memref<4xf32, #tpu.memory_space<smem>>
    %67 = vector.broadcast %66 : f32 to vector<1x256xf32>
    %68 = arith.addf %65, %67 : vector<1x256xf32>
    %c0_54 = arith.constant 0 : index
    %c0_55 = arith.constant 0 : index
    %c0_56 = arith.constant 0 : index
    %69 = vector.load %arg4[%c0_54, %c0_55, %c0_56] : memref<1x4x256xf32, #tpu.memory_space<vmem>>, vector<1x1x256xf32>
    %70 = vector.shape_cast %69 : vector<1x1x256xf32> to vector<1x256xf32>
    %c2_57 = arith.constant 2 : index
    %c0_58 = arith.constant 0 : index
    %71 = memref.load %arg2[%c2_57, %c0_58] : memref<4x4xf32, #tpu.memory_space<smem>>
    %72 = vector.broadcast %71 : f32 to vector<1x256xf32>
    %73 = arith.mulf %70, %72 : vector<1x256xf32>
    %74 = arith.addf %68, %73 : vector<1x256xf32>
    %c0_59 = arith.constant 0 : index
    %c1_60 = arith.constant 1 : index
    %c0_61 = arith.constant 0 : index
    %75 = vector.load %arg4[%c0_59, %c1_60, %c0_61] : memref<1x4x256xf32, #tpu.memory_space<vmem>>, vector<1x1x256xf32>
    %76 = vector.shape_cast %75 : vector<1x1x256xf32> to vector<1x256xf32>
    %c2_62 = arith.constant 2 : index
    %c1_63 = arith.constant 1 : index
    %77 = memref.load %arg2[%c2_62, %c1_63] : memref<4x4xf32, #tpu.memory_space<smem>>
    %78 = vector.broadcast %77 : f32 to vector<1x256xf32>
    %79 = arith.mulf %76, %78 : vector<1x256xf32>
    %80 = arith.addf %74, %79 : vector<1x256xf32>
    %c0_64 = arith.constant 0 : index
    %c2_65 = arith.constant 2 : index
    %c0_66 = arith.constant 0 : index
    %81 = vector.load %arg4[%c0_64, %c2_65, %c0_66] : memref<1x4x256xf32, #tpu.memory_space<vmem>>, vector<1x1x256xf32>
    %82 = vector.shape_cast %81 : vector<1x1x256xf32> to vector<1x256xf32>
    %c2_67 = arith.constant 2 : index
    %c2_68 = arith.constant 2 : index
    %83 = memref.load %arg2[%c2_67, %c2_68] : memref<4x4xf32, #tpu.memory_space<smem>>
    %84 = vector.broadcast %83 : f32 to vector<1x256xf32>
    %85 = arith.mulf %82, %84 : vector<1x256xf32>
    %86 = arith.addf %80, %85 : vector<1x256xf32>
    %c0_69 = arith.constant 0 : index
    %c3_70 = arith.constant 3 : index
    %c0_71 = arith.constant 0 : index
    %87 = vector.load %arg4[%c0_69, %c3_70, %c0_71] : memref<1x4x256xf32, #tpu.memory_space<vmem>>, vector<1x1x256xf32>
    %88 = vector.shape_cast %87 : vector<1x1x256xf32> to vector<1x256xf32>
    %c2_72 = arith.constant 2 : index
    %c3_73 = arith.constant 3 : index
    %89 = memref.load %arg2[%c2_72, %c3_73] : memref<4x4xf32, #tpu.memory_space<smem>>
    %90 = vector.broadcast %89 : f32 to vector<1x256xf32>
    %91 = arith.mulf %88, %90 : vector<1x256xf32>
    %92 = arith.addf %86, %91 : vector<1x256xf32>
    %c0_74 = arith.constant 0 : index
    %c2_75 = arith.constant 2 : index
    %c0_76 = arith.constant 0 : index
    %93 = vector.load %arg5[%c0_74, %c2_75, %c0_76] : memref<1x4x256xf32, #tpu.memory_space<vmem>>, vector<1x1x256xf32>
    %94 = vector.shape_cast %93 : vector<1x1x256xf32> to vector<1x256xf32>
    %95 = vector.shape_cast %92 : vector<1x256xf32> to vector<1x1x256xf32>
    tpu.vector_store %arg5[%c0_74, %c2_75, %c0_76], %95 {strides = array<i32>} : memref<1x4x256xf32, #tpu.memory_space<vmem>>, vector<1x1x256xf32>,
    %c0_77 = arith.constant 0 : index
    %c3_78 = arith.constant 3 : index
    %c0_79 = arith.constant 0 : index
    %96 = vector.load %arg4[%c0_77, %c3_78, %c0_79] : memref<1x4x256xf32, #tpu.memory_space<vmem>>, vector<1x1x256xf32>
    %97 = vector.shape_cast %96 : vector<1x1x256xf32> to vector<1x256xf32>
    %c3_80 = arith.constant 3 : index
    %98 = memref.load %arg3[%c3_80] : memref<4xf32, #tpu.memory_space<smem>>
    %99 = vector.broadcast %98 : f32 to vector<1x256xf32>
    %100 = arith.addf %97, %99 : vector<1x256xf32>
    %c0_81 = arith.constant 0 : index
    %c0_82 = arith.constant 0 : index
    %c0_83 = arith.constant 0 : index
    %101 = vector.load %arg4[%c0_81, %c0_82, %c0_83] : memref<1x4x256xf32, #tpu.memory_space<vmem>>, vector<1x1x256xf32>
    %102 = vector.shape_cast %101 : vector<1x1x256xf32> to vector<1x256xf32>
    %c3_84 = arith.constant 3 : index
    %c0_85 = arith.constant 0 : index
    %103 = memref.load %arg2[%c3_84, %c0_85] : memref<4x4xf32, #tpu.memory_space<smem>>
    %104 = vector.broadcast %103 : f32 to vector<1x256xf32>
    %105 = arith.mulf %102, %104 : vector<1x256xf32>
    %106 = arith.addf %100, %105 : vector<1x256xf32>
    %c0_86 = arith.constant 0 : index
    %c1_87 = arith.constant 1 : index
    %c0_88 = arith.constant 0 : index
    %107 = vector.load %arg4[%c0_86, %c1_87, %c0_88] : memref<1x4x256xf32, #tpu.memory_space<vmem>>, vector<1x1x256xf32>
    %108 = vector.shape_cast %107 : vector<1x1x256xf32> to vector<1x256xf32>
    %c3_89 = arith.constant 3 : index
    %c1_90 = arith.constant 1 : index
    %109 = memref.load %arg2[%c3_89, %c1_90] : memref<4x4xf32, #tpu.memory_space<smem>>
    %110 = vector.broadcast %109 : f32 to vector<1x256xf32>
    %111 = arith.mulf %108, %110 : vector<1x256xf32>
    %112 = arith.addf %106, %111 : vector<1x256xf32>
    %c0_91 = arith.constant 0 : index
    %c2_92 = arith.constant 2 : index
    %c0_93 = arith.constant 0 : index
    %113 = vector.load %arg4[%c0_91, %c2_92, %c0_93] : memref<1x4x256xf32, #tpu.memory_space<vmem>>, vector<1x1x256xf32>
    %114 = vector.shape_cast %113 : vector<1x1x256xf32> to vector<1x256xf32>
    %c3_94 = arith.constant 3 : index
    %c2_95 = arith.constant 2 : index
    %115 = memref.load %arg2[%c3_94, %c2_95] : memref<4x4xf32, #tpu.memory_space<smem>>
    %116 = vector.broadcast %115 : f32 to vector<1x256xf32>
    %117 = arith.mulf %114, %116 : vector<1x256xf32>
    %118 = arith.addf %112, %117 : vector<1x256xf32>
    %c0_96 = arith.constant 0 : index
    %c3_97 = arith.constant 3 : index
    %c0_98 = arith.constant 0 : index
    %119 = vector.load %arg4[%c0_96, %c3_97, %c0_98] : memref<1x4x256xf32, #tpu.memory_space<vmem>>, vector<1x1x256xf32>
    %120 = vector.shape_cast %119 : vector<1x1x256xf32> to vector<1x256xf32>
    %c3_99 = arith.constant 3 : index
    %c3_100 = arith.constant 3 : index
    %121 = memref.load %arg2[%c3_99, %c3_100] : memref<4x4xf32, #tpu.memory_space<smem>>
    %122 = vector.broadcast %121 : f32 to vector<1x256xf32>
    %123 = arith.mulf %120, %122 : vector<1x256xf32>
    %124 = arith.addf %118, %123 : vector<1x256xf32>
    %c0_101 = arith.constant 0 : index
    %c3_102 = arith.constant 3 : index
    %c0_103 = arith.constant 0 : index
    %125 = vector.load %arg5[%c0_101, %c3_102, %c0_103] : memref<1x4x256xf32, #tpu.memory_space<vmem>>, vector<1x1x256xf32>
    %126 = vector.shape_cast %125 : vector<1x1x256xf32> to vector<1x256xf32>
    %127 = vector.shape_cast %124 : vector<1x256xf32> to vector<1x1x256xf32>
    tpu.vector_store %arg5[%c0_101, %c3_102, %c0_103], %127 {strides = array<i32>} : memref<1x4x256xf32, #tpu.memory_space<vmem>>, vector<1x1x256xf32>,
    return
  }
  func.func @transform_0(%arg0: i32, %arg1: i32) -> (i32, i32) {
    %c0_i32 = arith.constant 0 : i32
    %c0_i32_0 = arith.constant 0 : i32
    %c0_i32_1 = arith.constant 0 : i32
    return %c0_i32, %c0_i32_0 : i32, i32
  }
  func.func @transform_1(%arg0: i32, %arg1: i32) -> i32 {
    %c0_i32 = arith.constant 0 : i32
    %c0_i32_0 = arith.constant 0 : i32
    return %c0_i32 : i32
  }
  func.func @transform_2(%arg0: i32, %arg1: i32) -> (i32, i32, i32) {
    %c0_i32 = arith.constant 0 : i32
    %c0_i32_0 = arith.constant 0 : i32
    return %arg0, %c0_i32, %arg1 : i32, i32, i32
  }
  func.func @transform_3(%arg0: i32, %arg1: i32) -> (i32, i32, i32) {
    %c0_i32 = arith.constant 0 : i32
    %c0_i32_0 = arith.constant 0 : i32
    return %arg0, %c0_i32, %arg1 : i32, i32, i32
  }
}

</mosaic_0001>

<bundles_post_ra>
// kernel: _residual_pointwise_impl.1
= control target key start
LH: loop header
LB: loop body
LE: loop exit
PB: predicated region body
PF: predicated region fallthrough
CT: control target
= control target key end

     0   :  { %8 = vsyncpa [#allocation3], 0  ;;  %s765_s0 = inlined_call_operand.vmem [shape: f32[4,4], index: 0, kind: input, shape index: {}]   ;;  %s766_s1 = inlined_call_operand.vmem [shape: f32[4], index: 1, kind: input, shape index: {}]   ;;  %s767_s2 = inlined_call_operand.vmem [shape: f32[2,4,256], index: 2, kind: input, shape index: {}]   ;;  %s768_s3 = inlined_call_operand.vmem [shape: f32[2,4,256], index: 3, kind: output, shape index: {}]  }
   0x1   :  { %9 = vsyncpa [#allocation5], 0  ;;  %s631_s12 = smov 0   ;;  %s633_s13 = smov 0  }
   0x2   :  { %s635_s14 = smov 0  }
   0x3 LB: > { %s452_s15 = sadd.s32 4294967295, %s607_s14   ;;  %s27_s16 = sadd.s32 1, %s603_s13  ;;  %s607_s14 = sphi %s635_s14, %s15_s14   ;;  %s603_s13 = sphi %s633_s13, %s780_s13   ;;  %s599_s12 = sphi %s631_s12, %s779_s12  }
   0x4   : > { %p29_p0 = scmp.ge.s32.totalorder %s27_s16, 2  ;;  %p454_p1 = scmp.ge.s32.totalorder %s607_s14, 1 }
   0x5   : > { %p130_p2 = scmp.lt.s32.totalorder %s607_s14, 3  ;;  %p656_p4 = scmp.eq.s32.totalorder %s452_s15, 0 }
   0x6   : > { %s782_s16 = smov (%p29_p0, %s27_s16), 0  ;;  %s143_s21 = sshll.u32 %s765_s0, 4  ;;  %s144_s21 = int_to_ptr.vmem [resolvable:$true] %s143_s21 }
   0x7   : > { %p652_p3 = pnand %p454_p1, %p130_p2  ;;  %s154_s24 = sshll.u32 %s766_s1, 4  ;;  %s155_s24 = int_to_ptr.vmem [resolvable:$true] %s154_s24 }
   0x8   : > { %s773_s18 = scalar_select %p656_p4, 1, 0 }
   0x9   : > { %s772_s17 = scalar_select %p652_p3, 1, 0 }
   0xa   : > { %p510_p5 = pneg %p652_p3  ;;  %s547_s26 = scalar_lea.vmem %s144_s21, 64 }
   0xb   : > { %p548_p7 = scmp.ne.s32.totalorder %s144_s21, %s547_s26  ;;  %p555_p11 = scmp.lt.s32.totalorder %s144_s21, %s144_s21 }
   0xc   : > { %p670_p6 = pnand %p656_p4, %p510_p5  ;;  %p556_p12 = scmp.lt.s32.totalorder %s547_s26, %s547_s26 }
   0xe   : > { %p549_p8 = pneg %p670_p6  ;;  %p557_p13 = por %p556_p12, %p555_p11 }
  0x10   : > { %p550_p9 = pnand %p549_p8, %p548_p7 }
  0x12   : > { %p551_p10 = pneg %p550_p9 }
  0x14   : > { %p558_p0 = pnand %p557_p13, %p551_p10 }
  0x16   : > { %561 = shalt.err (!%p558_p0)
}
  0x17   : > { %s609_s27 = smov [#allocation2]   ;;  %s562_s28 = scalar_lea.vmem %s155_s24, 16 }
  0x18   : > { %513 = dma.vmem_to_smem (!%p670_p6), %s144_s21, 64, %s609_s27, [#allocation3]  }
  0x19   : > { %p563_p1 = scmp.ne.s32.totalorder %s155_s24, %s562_s28  ;;  %p570_p4 = scmp.lt.s32.totalorder %s155_s24, %s155_s24 }
  0x1a   : > { %p571_p3 = scmp.lt.s32.totalorder %s562_s28, %s562_s28 }
  0x1b   : > { %p565_p2 = pnand %p563_p1, %p549_p8 }
  0x1c   : > { %p572_p7 = por %p571_p3, %p570_p4 }
  0x1d   : > { %p566_p5 = pneg %p565_p2 }
  0x1f   : > { %p573_p9 = pnand %p572_p7, %p566_p5 }
  0x21   : > { %576 = shalt.err (!%p573_p9)
}
  0x22   : > { %s610_s29 = smov [#allocation4]   ;;  %p775_p10 = scmp.ne.s32.totalorder %s772_s17, 0 }
  0x23   : > { %516 = dma.vmem_to_smem (!%p670_p6), %s155_s24, 16, %s610_s29, [#allocation5]  }
  0x24   : > { %180 = sbr.rel (%p775_p10) target bundleno = 79 (0x4f), region = 32  ;;  %p776_p11 = scmp.ne.s32.totalorder (!%p775_p10), %s773_s18, 0 }
  0x2b   : > { %590 = dma.done.wait (%p776_p11), [#allocation3], 64  }
  0x2c   : > { %592 = vsyncadd (%p776_p11), [#allocation3], 4294967232 }
  0x2d   : > { %594 = dma.done.wait (%p776_p11), [#allocation5], 16  }
  0x2e   : > { %596 = vsyncadd (%p776_p11), [#allocation5], 4294967280 }
  0x2f   : > { %190 = sfence }
  0x30   : > { %p218_p3 = scmp.lt.s32.totalorder %s599_s12, 1  ;;  %s238_s30 = sld [smem:[#allocation4]]  ;;  %v263_v14 = vlaneseq }
  0x31   : > { %s241_s4 = sld [smem:[#allocation2]]  ;;  %s466_s5 = sld [smem:[#allocation2 + $0x1]] }
  0x32   : > { %s784_s12 = smov (!%p218_p3, %s599_s12), 1  ;;  %s468_s6 = sld [smem:[#allocation2 + $0x2]]  ;;  %vm724_vm0 = vcmp.lt.s32.totalorder %v263_v14, 256 }
  0x33   : > { %s470_s7 = sld [smem:[#allocation2 + $0x3]]  ;;  %s500_s8 = sshll.u32 %s784_s12, 3 }
  0x34   : > { %s472_s9 = sld [smem:[#allocation4 + $0x1]]  ;;  %s700_s15 = scalar_lea.vmem %s767_s2, %s500_s8 }
  0x35   : > { %v237_v0 = vld [vmem:[%s700_s15] ss:$4 sm:$0x3]  ;;  %v465_v2 = vld [vmem:[%s700_s15 + $0x1] ss:$4 sm:$0x3]  ;;  %s722_s26 = scalar_lea.vmem %s768_s3, %s500_s8 }
  0x36   : > { %v239_v1 = vstv %s238_s30  ;;  %v467_v6 = vld [vmem:[%s700_s15 + $0x2] ss:$4 sm:$0x3]  ;;  %v469_v9 = vld [vmem:[%s700_s15 + $0x3] ss:$4 sm:$0x3] }
  0x37   : > { %v240_v3 = vadd.f32 %v239_v1, %v237_v0  ;;  %v242_v4 = vstv %s241_s4  ;;  %v248_v5 = vstv %s466_s5  ;;  %s473_s17 = sld [smem:[#allocation2 + $0x80]]  ;;  %s474_s18 = sld [smem:[#allocation2 + $0x81]]  ;;  %v471_v15 = vld [vmem:[%s700_s15 + $0x1] ss:$4 sm:$0x3] }
  0x38   : > { %v243_v7 = vmul.f32 %v242_v4, %v237_v0  ;;  %v249_v8 = vmul.f32 %v465_v2, %v248_v5  ;;  %v254_v10 = vstv %s468_s6  ;;  %s706_s19 = sld [smem:[#allocation2 + $0x82]]  ;;  %s709_s20 = sld [smem:[#allocation2 + $0x83]]  ;;  %v272_v19 = vld [vmem:[%s700_s15] ss:$4 sm:$0x3] }
  0x39   : > { %v260_v11 = vstv %s470_s7  ;;  %v255_v13 = vmul.f32 %v467_v6, %v254_v10  ;;  %s481_s21 = sld [smem:[#allocation4 + $0x2]]  ;;  %s712_s22 = sld [smem:[#allocation2 + $0x100]]  ;;  %v475_v22 = vld [vmem:[%s700_s15 + $0x2] ss:$4 sm:$0x3] }
  0x3a   : > { %v244_v12 = vadd.f32 %v243_v7, %v240_v3  ;;  %v270_v16 = vstv %s472_s9  ;;  %v261_v18 = vmul.f32 %v469_v9, %v260_v11  ;;  %s715_s23 = sld [smem:[#allocation2 + $0x101]]  ;;  %v477_v26 = vld [vmem:[%s700_s15 + $0x3] ss:$4 sm:$0x3]  ;;  %s729_s27 = sld [smem:[#allocation2 + $0x102]] }
  0x3b   : > { %v271_v21 = vadd.f32 %v471_v15, %v270_v16  ;;  %v480_v31 = vld [vmem:[%s700_s15 + $0x2] ss:$4 sm:$0x3]  ;;  %s487_s12 = sld [smem:[#allocation2 + $0x103]]  ;;  %s491_s29 = sld [smem:[#allocation2 + $0x180]] }
  0x3c   : > { %v250_v17 = vadd.f32 %v249_v8, %v244_v12  ;;  %v297_v33 = vld [vmem:[%s700_s15] ss:$4 sm:$0x3]  ;;  %s490_s28 = sld [smem:[#allocation4 + $0x3]]  ;;  %s493_s30 = sld [smem:[#allocation2 + $0x181]] }
  0x3d   : > { %v274_v24 = vstv %s473_s17  ;;  %v278_v25 = vstv %s474_s18  ;;  %v483_v37 = vld [vmem:[%s700_s15 + $0x1] ss:$4 sm:$0x3]  ;;  %v486_v40 = vld [vmem:[%s700_s15 + $0x3] ss:$4 sm:$0x3] }
  0x3e   : > { %v256_v20 = vadd.f32 %v255_v13, %v250_v17  ;;  %v275_v28 = vmul.f32 %v274_v24, %v272_v19  ;;  %v279_v29 = vmul.f32 %v471_v15, %v278_v25  ;;  %v283_v30 = vstv %s706_s19  ;;  %s495_s4 = sld [smem:[#allocation2 + $0x182]]  ;;  %s496_s5 = sld [smem:[#allocation2 + $0x183]]  ;;  %v489_v47 = vld [vmem:[%s700_s15 + $0x3] ss:$4 sm:$0x3] }
  0x3f   : > { %v288_v32 = vstv %s709_s20  ;;  %v284_v35 = vmul.f32 %v475_v22, %v283_v30  ;;  %v295_v36 = vstv %s481_s21  ;;  %v299_v39 = vstv %s712_s22  ;;  %v322_v52 = vld [vmem:[%s700_s15] ss:$4 sm:$0x3] }
  0x40   : > { %v262_v27 = vadd.f32 %v261_v18, %v256_v20  ;;  %v276_v34 = vadd.f32 %v275_v28, %v271_v21  ;;  %v296_v38 = vadd.f32 %v480_v31, %v295_v36  ;;  %v289_v42 = vmul.f32 %v477_v26, %v288_v32  ;;  %v492_v55 = vld [vmem:[%s700_s15 + $0x1] ss:$4 sm:$0x3]  ;;  %v494_v60 = vld [vmem:[%s700_s15 + $0x2] ss:$4 sm:$0x3] }
  0x41   : > { %v300_v43 = vmul.f32 %v299_v39, %v297_v33  ;;  %v304_v44 = vstv %s715_s23  ;;  %v308_v46 = vstv %s729_s27  ;;  %v313_v51 = vstv %s487_s12 }
  0x42   : > { %267 = vst.msk [vmem:[%s722_s26] ss:$4 sm:$0x3] %vm724_vm0, %v262_v27  ;;  %v280_v41 = vadd.f32 %v279_v29, %v276_v34  ;;  %v305_v45 = vmul.f32 %v483_v37, %v304_v44  ;;  %v309_v50 = vmul.f32 %v480_v31, %v308_v46  ;;  %v314_v53 = vmul.f32 %v486_v40, %v313_v51 }
  0x43   : > { %v301_v49 = vadd.f32 %v300_v43, %v296_v38  ;;  %v320_v54 = vstv %s490_s28  ;;  %v324_v59 = vstv %s491_s29  ;;  %v329_v62 = vstv %s493_s30 }
  0x44   : > { %v285_v48 = vadd.f32 %v284_v35, %v280_v41  ;;  %v321_v58 = vadd.f32 %v489_v47, %v320_v54  ;;  %v325_v61 = vmul.f32 %v324_v59, %v322_v52  ;;  %v330_v0 = vmul.f32 %v492_v55, %v329_v62 }
  0x45   : > { %v306_v57 = vadd.f32 %v305_v45, %v301_v49  ;;  %v334_v1 = vstv %s495_s4  ;;  %v338_v2 = vstv %s496_s5 }
  0x46   : > { %v290_v56 = vadd.f32 %v289_v42, %v285_v48  ;;  %v326_v3 = vadd.f32 %v325_v61, %v321_v58  ;;  %v335_v4 = vmul.f32 %v494_v60, %v334_v1  ;;  %v339_v7 = vmul.f32 %v489_v47, %v338_v2 }
  0x47   : > { %v310_v63 = vadd.f32 %v309_v50, %v306_v57 }
  0x48   : > { %479 = vst.msk [vmem:[%s722_s26 + $0x1] ss:$4 sm:$0x3] %vm724_vm0, %v290_v56  ;;  %v331_v6 = vadd.f32 %v330_v0, %v326_v3 }
  0x49   : > { %v315_v5 = vadd.f32 %v314_v53, %v310_v63 }
  0x4a   : > { %v336_v8 = vadd.f32 %v335_v4, %v331_v6 }
  0x4b   : > { %488 = vst.msk [vmem:[%s722_s26 + $0x2] ss:$4 sm:$0x3] %vm724_vm0, %v315_v5 }
  0x4c   : > { %v340_v9 = vadd.f32 %v339_v7, %v336_v8 }
  0x4e   : > { %497 = vst.msk [vmem:[%s722_s26 + $0x3] ss:$4 sm:$0x3] %vm724_vm0, %v340_v9 }
  0x4f PF: > { %s15_s14 = sadd.s32 1, %s607_s14   ;;  %s779_s12 = smov %s603_s13 }
  0x50   : > { %p12_p4 = scmp.ge.s32.totalorder %s15_s14, 4   ;;  %s780_s13 = smov %s782_s16 }
  0x52   :  { %14 = sbr.rel (!%p12_p4) target bundleno = 3 (0x3), region = 77 }
  0x59   :  { %373 = vsyncpa [#allocation3], 1 }
  0x5a   :  { %375 = vsyncpa [#allocation3 + $0x1], 1 }
  0x5b   :  { %376 = vsyncpa [#allocation5], 1 }

</bundles_post_ra>
